<compile_context>
chip_gen: v6e
topology: v6e:2x2x1
jax: 0.10.0
libtpu: 0.0.40
codegen_flags: <defaults>
</compile_context>

<pallas_src>
import functools

import jax
import jax.numpy as jnp
import numpy as np
from jax import lax
from jax.experimental import pallas as pl
from jax.experimental.pallas import tpu as pltpu

BN_EPS = 1e-5
# bf16 operands are the right call on v6e/v7x for MXU-/DMA-bound shapes, but
# break the 1e-4 f32 reference tolerance of this test -> keep f32 here.
MATMUL_DTYPE = jnp.float32


# ----------------------------- Pallas kernel ---------------------------------

def conv_stats_kernel(x_ref, wb_ref, y_ref, stats_ref):
    """3x3 conv (stride 1, pad 1) + lane-dense BN partials for Nb images.

    x_ref:     (Nb, H+2, W*Cin)    images, H padded by one zero row each side
    wb_ref:    (3, W*Cin, W*Cout)  banded weights (kw & Cin folded into K)
    y_ref:     (Nb, H, W*Cout)     conv output, lane-dense last dim
    stats_ref: (Nb, 2, W*Cout)     row 0: sum over H, row 1: sum of squares
    """
    Nb, H, WCo = y_ref.shape

    for n in range(Nb):            # small static unroll (Nb*H ~ 128 rows/step)
        # 3 accumulating MXU matmuls: K = W*Cin, N = W*Cout (lane-dense).
        acc = jnp.zeros((H, WCo), jnp.float32)
        for kh in range(3):
            acc += jnp.dot(x_ref[n, pl.ds(kh, H), :], wb_ref[kh],
                           preferred_element_type=jnp.float32)

        y_ref[n] = acc.astype(y_ref.dtype)

        # Lane-dense BN partials: two full-lane (1, W*Cout) stores, no
        # lane->sublane relayout, no masked tiny stores.
        stats_ref[n, 0:1, :] = acc.sum(axis=0, keepdims=True)
        stats_ref[n, 1:2, :] = (acc * acc).sum(axis=0, keepdims=True)


# ------------------------------ wrapper ---------------------------------------

@functools.lru_cache(maxsize=None)
def _shift_onehot(W):
    """Constant one-hot: sh[kw, wi, wo] = 1 iff wi == wo + kw - 1, 0 <= wi < W."""
    sh = np.zeros((3, W, W), np.float32)
    for kw in range(3):
        for wo in range(W):
            wi = wo + kw - 1
            if 0 <= wi < W:
                sh[kw, wi, wo] = 1.0
    return sh


def _build_band(w_hwio, W):
    """Banded weight via one einsum against the constant shift tensor.

    band[kh, wi*Cin + ci, wo*Cout + co] = w[kh, wi-wo+1, ci, co] if in range
    (out-of-range taps are simply zero == W-padding). Shape (3, W*Cin, W*Cout).
    """
    _, _, Cin, Cout = w_hwio.shape
    shift = jnp.asarray(_shift_onehot(W))                       # (kw, wi, wo)
    band5 = jnp.einsum('qab,kqio->kaibo', shift, w_hwio)        # (kh,wi,ci,wo,co)
    return band5.reshape(3, W * Cin, W * Cout)


def _pick_batch_block(N, H):
    """Largest divisor of N with Nb*H around 128 rows (MXU fill / step amortize)."""
    target = max(1, 128 // max(H, 1))
    for nb in range(min(N, target), 0, -1):
        if N % nb == 0:
            return nb
    return 1


@jax.jit
def conv_bn_relu(x_nchw, weight_oihw, gamma, beta):
    """Forward of ConvBNRelu. x_nchw: (N, Cin, H, W) f32. Returns (N, Cout, H, W)."""
    N, Cin, H, W = x_nchw.shape
    Cout = weight_oihw.shape[0]
    WCi, WCo = W * Cin, W * Cout
    Nb = _pick_batch_block(N, H)

    # Layout glue: NCHW -> (N, H+2, W*Cin) with the H zero-halo folded into the
    # transpose copy; OIHW -> HWIO -> banded (3, W*Cin, W*Cout) (one einsum).
    x = jnp.transpose(x_nchw, (0, 2, 3, 1)).astype(jnp.float32).reshape(N, H, WCi)
    x = jnp.pad(x, ((0, 0), (1, 1), (0, 0))).astype(MATMUL_DTYPE)
    w_hwio = jnp.transpose(weight_oihw, (2, 3, 1, 0)).astype(jnp.float32)
    band = _build_band(w_hwio, W).astype(MATMUL_DTYPE)

    conv, stats = pl.pallas_call(
        conv_stats_kernel,
        out_shape=(
            jax.ShapeDtypeStruct((N, H, WCo), jnp.float32),
            jax.ShapeDtypeStruct((N, 2, WCo), jnp.float32),
        ),
        grid_spec=pltpu.PrefetchScalarGridSpec(
            num_scalar_prefetch=0,
            grid=(N // Nb,),
            in_specs=[
                pl.BlockSpec((Nb, H + 2, WCi), lambda n: (n, 0, 0)),
                # Grid-invariant band; at real (large-W) shapes single-buffer
                # it and tile W so band + blocks fit v7x's 64 MiB VMEM.
                pl.BlockSpec((3, WCi, WCo), lambda n: (0, 0, 0)),
            ],
            out_specs=[
                pl.BlockSpec((Nb, H, WCo), lambda n: (n, 0, 0)),
                pl.BlockSpec((Nb, 2, WCo), lambda n: (n, 0, 0)),
            ],
        ),
        # Per-step partial stats -> no resident accumulator -> batch-block axis
        # is parallel (megacore sharding on v7x).
        compiler_params=pltpu.CompilerParams(
            dimension_semantics=("parallel",)),
    )(x, band)

    # Fold training-mode BatchNorm (biased batch variance) into scale/shift.
    cnt = jnp.float32(N * H * W)
    per_c = stats.sum(axis=0).reshape(2, W, Cout).sum(axis=1)   # (2, Cout)
    mean = per_c[0] / cnt
    var = jnp.maximum(per_c[1] / cnt - mean * mean, 0.0)        # guard cancellation
    scale = gamma.astype(jnp.float32) / jnp.sqrt(var + BN_EPS)
    shift = beta.astype(jnp.float32) - mean * scale

    # BN affine + ReLU, fused by XLA with the required NHWC->NCHW transpose
    # (single read + write of the conv activation).
    scale_row = jnp.tile(scale, W)[None, None, :]               # (1, 1, W*Cout)
    shift_row = jnp.tile(shift, W)[None, None, :]
    y = jnp.maximum(conv * scale_row + shift_row, 0.0)          # (N, H, W*Cout)
    return y.reshape(N, H, W, Cout).transpose(0, 3, 1, 2)


# --------------------------- pure-JAX reference -------------------------------

def conv_bn_relu_ref(x_nchw, weight_oihw, gamma, beta):
    y = lax.conv_general_dilated(
        x_nchw, weight_oihw, window_strides=(1, 1), padding=((1, 1), (1, 1)),
        dimension_numbers=("NCHW", "OIHW", "NCHW"))
    mean = y.mean(axis=(0, 2, 3))
    var = y.var(axis=(0, 2, 3))  # biased, as in training-mode BN normalization
    y = (y - mean[None, :, None, None]) / jnp.sqrt(var[None, :, None, None] + BN_EPS)
    y = y * gamma[None, :, None, None] + beta[None, :, None, None]
    return jnp.maximum(y, 0.0)


# ------------------------------- main -----------------------------------------

if __name__ == "__main__":
    key = jax.random.PRNGKey(0)
    k_x, k_w, k_g, k_b = jax.random.split(key, 4)

    N, Cin, Cout, H, W = 2, 4, 8, 16, 16

    x = jax.random.normal(k_x, (N, Cin, H, W), dtype=jnp.float32)
    fan_in = Cin * 3 * 3
    weight = jax.random.normal(k_w, (Cout, Cin, 3, 3), dtype=jnp.float32) / np.sqrt(fan_in)
    gamma = 1.0 + 0.1 * jax.random.normal(k_g, (Cout,), dtype=jnp.float32)
    beta = 0.1 * jax.random.normal(k_b, (Cout,), dtype=jnp.float32)

    out = jax.block_until_ready(conv_bn_relu(x, weight, gamma, beta))
    ref = jax.block_until_ready(conv_bn_relu_ref(x, weight, gamma, beta))

    np.testing.assert_allclose(np.asarray(out), np.asarray(ref), atol=1e-4, rtol=1e-4)
    print("KERNEL_OK")
</pallas_src>

<mosaic_0001>
module attributes {stable_mosaic.version = 11 : i64} {
  func.func @conv_stats_kernel(%arg0: i32, %arg1: memref<2x18x64xf32, #tpu.memory_space<vmem>>, %arg2: memref<3x64x128xf32, #tpu.memory_space<vmem>>, %arg3: memref<2x16x128xf32, #tpu.memory_space<vmem>>, %arg4: memref<2x2x128xf32, #tpu.memory_space<vmem>>) attributes {dimension_semantics = [#tpu.dimension_semantics<parallel>], iteration_bounds = array<i64: 1>, scalar_prefetch = 0 : i64, scratch_operands = 0 : i64, tpu.core_type = #tpu.core_type<tc>, window_params = [{transform_indices = @transform_0, window_bounds = array<i64: 2, 18, 64>}, {pipeline_mode = #tpu.pipeline_mode<synchronous>, transform_indices = @transform_1, window_bounds = array<i64: 3, 64, 128>}, {transform_indices = @transform_2, window_bounds = array<i64: 2, 16, 128>}, {transform_indices = @transform_3, window_bounds = array<i64: 2, 2, 128>}]} {
    %cst = arith.constant 0.000000e+00 : f32
    %0 = vector.broadcast %cst : f32 to vector<16x128xf32>
    %c0 = arith.constant 0 : index
    %c0_0 = arith.constant 0 : index
    %c0_1 = arith.constant 0 : index
    %1 = vector.load %arg1[%c0, %c0_0, %c0_1] : memref<2x18x64xf32, #tpu.memory_space<vmem>>, vector<1x16x64xf32>
    %2 = vector.shape_cast %1 : vector<1x16x64xf32> to vector<16x64xf32>
    %c0_2 = arith.constant 0 : index
    %c0_3 = arith.constant 0 : index
    %c0_4 = arith.constant 0 : index
    %3 = vector.load %arg2[%c0_2, %c0_3, %c0_4] : memref<3x64x128xf32, #tpu.memory_space<vmem>>, vector<1x64x128xf32>
    %4 = vector.shape_cast %3 : vector<1x64x128xf32> to vector<64x128xf32>
    %cst_5 = arith.constant dense<0.000000e+00> : vector<16x128xf32>
    %5 = tpu.matmul %2, %4, %cst_5 {dimension_numbers = #tpu.dot_dimension_numbers<[1], [0], [0], [1], [0, 0, 1, 1], [], []>} : vector<16x64xf32>, vector<64x128xf32>, vector<16x128xf32> -> vector<16x128xf32>
    %6 = arith.addf %0, %5 : vector<16x128xf32>
    %c0_6 = arith.constant 0 : index
    %c1 = arith.constant 1 : index
    %c0_7 = arith.constant 0 : index
    %7 = vector.load %arg1[%c0_6, %c1, %c0_7] : memref<2x18x64xf32, #tpu.memory_space<vmem>>, vector<1x16x64xf32>
    %8 = vector.shape_cast %7 : vector<1x16x64xf32> to vector<16x64xf32>
    %c1_8 = arith.constant 1 : index
    %c0_9 = arith.constant 0 : index
    %c0_10 = arith.constant 0 : index
    %9 = vector.load %arg2[%c1_8, %c0_9, %c0_10] : memref<3x64x128xf32, #tpu.memory_space<vmem>>, vector<1x64x128xf32>
    %10 = vector.shape_cast %9 : vector<1x64x128xf32> to vector<64x128xf32>
    %cst_11 = arith.constant dense<0.000000e+00> : vector<16x128xf32>
    %11 = tpu.matmul %8, %10, %cst_11 {dimension_numbers = #tpu.dot_dimension_numbers<[1], [0], [0], [1], [0, 0, 1, 1], [], []>} : vector<16x64xf32>, vector<64x128xf32>, vector<16x128xf32> -> vector<16x128xf32>
    %12 = arith.addf %6, %11 : vector<16x128xf32>
    %c0_12 = arith.constant 0 : index
    %c2 = arith.constant 2 : index
    %c0_13 = arith.constant 0 : index
    %13 = vector.load %arg1[%c0_12, %c2, %c0_13] : memref<2x18x64xf32, #tpu.memory_space<vmem>>, vector<1x16x64xf32>
    %14 = vector.shape_cast %13 : vector<1x16x64xf32> to vector<16x64xf32>
    %c2_14 = arith.constant 2 : index
    %c0_15 = arith.constant 0 : index
    %c0_16 = arith.constant 0 : index
    %15 = vector.load %arg2[%c2_14, %c0_15, %c0_16] : memref<3x64x128xf32, #tpu.memory_space<vmem>>, vector<1x64x128xf32>
    %16 = vector.shape_cast %15 : vector<1x64x128xf32> to vector<64x128xf32>
    %cst_17 = arith.constant dense<0.000000e+00> : vector<16x128xf32>
    %17 = tpu.matmul %14, %16, %cst_17 {dimension_numbers = #tpu.dot_dimension_numbers<[1], [0], [0], [1], [0, 0, 1, 1], [], []>} : vector<16x64xf32>, vector<64x128xf32>, vector<16x128xf32> -> vector<16x128xf32>
    %18 = arith.addf %12, %17 : vector<16x128xf32>
    %c0_18 = arith.constant 0 : index
    %c0_19 = arith.constant 0 : index
    %c0_20 = arith.constant 0 : index
    %19 = vector.load %arg3[%c0_18, %c0_19, %c0_20] : memref<2x16x128xf32, #tpu.memory_space<vmem>>, vector<1x16x128xf32>
    %20 = vector.shape_cast %19 : vector<1x16x128xf32> to vector<16x128xf32>
    %21 = vector.shape_cast %18 : vector<16x128xf32> to vector<1x16x128xf32>
    tpu.vector_store %arg3[%c0_18, %c0_19, %c0_20], %21 {strides = array<i32>} : memref<2x16x128xf32, #tpu.memory_space<vmem>>, vector<1x16x128xf32>,
    %cst_21 = arith.constant dense<0.000000e+00> : vector<128xf32>
    %22 = vector.multi_reduction <add>, %18, %cst_21 [0] : vector<16x128xf32> to vector<128xf32>
    %23 = vector.shape_cast %22 : vector<128xf32> to vector<1x128xf32>
    %c0_22 = arith.constant 0 : index
    %c0_23 = arith.constant 0 : index
    %c0_24 = arith.constant 0 : index
    %24 = vector.load %arg4[%c0_22, %c0_23, %c0_24] : memref<2x2x128xf32, #tpu.memory_space<vmem>>, vector<1x1x128xf32>
    %25 = vector.shape_cast %24 : vector<1x1x128xf32> to vector<1x128xf32>
    %26 = vector.shape_cast %23 : vector<1x128xf32> to vector<1x1x128xf32>
    tpu.vector_store %arg4[%c0_22, %c0_23, %c0_24], %26 {strides = array<i32>} : memref<2x2x128xf32, #tpu.memory_space<vmem>>, vector<1x1x128xf32>,
    %27 = arith.mulf %18, %18 : vector<16x128xf32>
    %cst_25 = arith.constant dense<0.000000e+00> : vector<128xf32>
    %28 = vector.multi_reduction <add>, %27, %cst_25 [0] : vector<16x128xf32> to vector<128xf32>
    %29 = vector.shape_cast %28 : vector<128xf32> to vector<1x128xf32>
    %c0_26 = arith.constant 0 : index
    %c1_27 = arith.constant 1 : index
    %c0_28 = arith.constant 0 : index
    %30 = vector.load %arg4[%c0_26, %c1_27, %c0_28] : memref<2x2x128xf32, #tpu.memory_space<vmem>>, vector<1x1x128xf32>
    %31 = vector.shape_cast %30 : vector<1x1x128xf32> to vector<1x128xf32>
    %32 = vector.shape_cast %29 : vector<1x128xf32> to vector<1x1x128xf32>
    tpu.vector_store %arg4[%c0_26, %c1_27, %c0_28], %32 {strides = array<i32>} : memref<2x2x128xf32, #tpu.memory_space<vmem>>, vector<1x1x128xf32>,
    %cst_29 = arith.constant 0.000000e+00 : f32
    %33 = vector.broadcast %cst_29 : f32 to vector<16x128xf32>
    %c1_30 = arith.constant 1 : index
    %c0_31 = arith.constant 0 : index
    %c0_32 = arith.constant 0 : index
    %34 = vector.load %arg1[%c1_30, %c0_31, %c0_32] : memref<2x18x64xf32, #tpu.memory_space<vmem>>, vector<1x16x64xf32>
    %35 = vector.shape_cast %34 : vector<1x16x64xf32> to vector<16x64xf32>
    %c0_33 = arith.constant 0 : index
    %c0_34 = arith.constant 0 : index
    %c0_35 = arith.constant 0 : index
    %36 = vector.load %arg2[%c0_33, %c0_34, %c0_35] : memref<3x64x128xf32, #tpu.memory_space<vmem>>, vector<1x64x128xf32>
    %37 = vector.shape_cast %36 : vector<1x64x128xf32> to vector<64x128xf32>
    %cst_36 = arith.constant dense<0.000000e+00> : vector<16x128xf32>
    %38 = tpu.matmul %35, %37, %cst_36 {dimension_numbers = #tpu.dot_dimension_numbers<[1], [0], [0], [1], [0, 0, 1, 1], [], []>} : vector<16x64xf32>, vector<64x128xf32>, vector<16x128xf32> -> vector<16x128xf32>
    %39 = arith.addf %33, %38 : vector<16x128xf32>
    %c1_37 = arith.constant 1 : index
    %c1_38 = arith.constant 1 : index
    %c0_39 = arith.constant 0 : index
    %40 = vector.load %arg1[%c1_37, %c1_38, %c0_39] : memref<2x18x64xf32, #tpu.memory_space<vmem>>, vector<1x16x64xf32>
    %41 = vector.shape_cast %40 : vector<1x16x64xf32> to vector<16x64xf32>
    %c1_40 = arith.constant 1 : index
    %c0_41 = arith.constant 0 : index
    %c0_42 = arith.constant 0 : index
    %42 = vector.load %arg2[%c1_40, %c0_41, %c0_42] : memref<3x64x128xf32, #tpu.memory_space<vmem>>, vector<1x64x128xf32>
    %43 = vector.shape_cast %42 : vector<1x64x128xf32> to vector<64x128xf32>
    %cst_43 = arith.constant dense<0.000000e+00> : vector<16x128xf32>
    %44 = tpu.matmul %41, %43, %cst_43 {dimension_numbers = #tpu.dot_dimension_numbers<[1], [0], [0], [1], [0, 0, 1, 1], [], []>} : vector<16x64xf32>, vector<64x128xf32>, vector<16x128xf32> -> vector<16x128xf32>
    %45 = arith.addf %39, %44 : vector<16x128xf32>
    %c1_44 = arith.constant 1 : index
    %c2_45 = arith.constant 2 : index
    %c0_46 = arith.constant 0 : index
    %46 = vector.load %arg1[%c1_44, %c2_45, %c0_46] : memref<2x18x64xf32, #tpu.memory_space<vmem>>, vector<1x16x64xf32>
    %47 = vector.shape_cast %46 : vector<1x16x64xf32> to vector<16x64xf32>
    %c2_47 = arith.constant 2 : index
    %c0_48 = arith.constant 0 : index
    %c0_49 = arith.constant 0 : index
    %48 = vector.load %arg2[%c2_47, %c0_48, %c0_49] : memref<3x64x128xf32, #tpu.memory_space<vmem>>, vector<1x64x128xf32>
    %49 = vector.shape_cast %48 : vector<1x64x128xf32> to vector<64x128xf32>
    %cst_50 = arith.constant dense<0.000000e+00> : vector<16x128xf32>
    %50 = tpu.matmul %47, %49, %cst_50 {dimension_numbers = #tpu.dot_dimension_numbers<[1], [0], [0], [1], [0, 0, 1, 1], [], []>} : vector<16x64xf32>, vector<64x128xf32>, vector<16x128xf32> -> vector<16x128xf32>
    %51 = arith.addf %45, %50 : vector<16x128xf32>
    %c1_51 = arith.constant 1 : index
    %c0_52 = arith.constant 0 : index
    %c0_53 = arith.constant 0 : index
    %52 = vector.load %arg3[%c1_51, %c0_52, %c0_53] : memref<2x16x128xf32, #tpu.memory_space<vmem>>, vector<1x16x128xf32>
    %53 = vector.shape_cast %52 : vector<1x16x128xf32> to vector<16x128xf32>
    %54 = vector.shape_cast %51 : vector<16x128xf32> to vector<1x16x128xf32>
    tpu.vector_store %arg3[%c1_51, %c0_52, %c0_53], %54 {strides = array<i32>} : memref<2x16x128xf32, #tpu.memory_space<vmem>>, vector<1x16x128xf32>,
    %cst_54 = arith.constant dense<0.000000e+00> : vector<128xf32>
    %55 = vector.multi_reduction <add>, %51, %cst_54 [0] : vector<16x128xf32> to vector<128xf32>
    %56 = vector.shape_cast %55 : vector<128xf32> to vector<1x128xf32>
    %c1_55 = arith.constant 1 : index
    %c0_56 = arith.constant 0 : index
    %c0_57 = arith.constant 0 : index
    %57 = vector.load %arg4[%c1_55, %c0_56, %c0_57] : memref<2x2x128xf32, #tpu.memory_space<vmem>>, vector<1x1x128xf32>
    %58 = vector.shape_cast %57 : vector<1x1x128xf32> to vector<1x128xf32>
    %59 = vector.shape_cast %56 : vector<1x128xf32> to vector<1x1x128xf32>
    tpu.vector_store %arg4[%c1_55, %c0_56, %c0_57], %59 {strides = array<i32>} : memref<2x2x128xf32, #tpu.memory_space<vmem>>, vector<1x1x128xf32>,
    %60 = arith.mulf %51, %51 : vector<16x128xf32>
    %cst_58 = arith.constant dense<0.000000e+00> : vector<128xf32>
    %61 = vector.multi_reduction <add>, %60, %cst_58 [0] : vector<16x128xf32> to vector<128xf32>
    %62 = vector.shape_cast %61 : vector<128xf32> to vector<1x128xf32>
    %c1_59 = arith.constant 1 : index
    %c1_60 = arith.constant 1 : index
    %c0_61 = arith.constant 0 : index
    %63 = vector.load %arg4[%c1_59, %c1_60, %c0_61] : memref<2x2x128xf32, #tpu.memory_space<vmem>>, vector<1x1x128xf32>
    %64 = vector.shape_cast %63 : vector<1x1x128xf32> to vector<1x128xf32>
    %65 = vector.shape_cast %62 : vector<1x128xf32> to vector<1x1x128xf32>
    tpu.vector_store %arg4[%c1_59, %c1_60, %c0_61], %65 {strides = array<i32>} : memref<2x2x128xf32, #tpu.memory_space<vmem>>, vector<1x1x128xf32>,
    return
  }
  func.func @transform_0(%arg0: i32) -> (i32, i32, i32) {
    %c0_i32 = arith.constant 0 : i32
    %c0_i32_0 = arith.constant 0 : i32
    %c0_i32_1 = arith.constant 0 : i32
    return %arg0, %c0_i32, %c0_i32_0 : i32, i32, i32
  }
  func.func @transform_1(%arg0: i32) -> (i32, i32, i32) {
    %c0_i32 = arith.constant 0 : i32
    %c0_i32_0 = arith.constant 0 : i32
    %c0_i32_1 = arith.constant 0 : i32
    %c0_i32_2 = arith.constant 0 : i32
    return %c0_i32, %c0_i32_0, %c0_i32_1 : i32, i32, i32
  }
  func.func @transform_2(%arg0: i32) -> (i32, i32, i32) {
    %c0_i32 = arith.constant 0 : i32
    %c0_i32_0 = arith.constant 0 : i32
    %c0_i32_1 = arith.constant 0 : i32
    return %arg0, %c0_i32, %c0_i32_0 : i32, i32, i32
  }
  func.func @transform_3(%arg0: i32) -> (i32, i32, i32) {
    %c0_i32 = arith.constant 0 : i32
    %c0_i32_0 = arith.constant 0 : i32
    %c0_i32_1 = arith.constant 0 : i32
    return %arg0, %c0_i32, %c0_i32_0 : i32, i32, i32
  }
}

</mosaic_0001>

<bundles_post_ra>
// kernel: tile.18
= control target key start
LH: loop header
LB: loop body
LE: loop exit
PB: predicated region body
PF: predicated region fallthrough
CT: control target
= control target key end

     0   :  { %s28_s0 = inlined_call_operand.vmem [shape: f32[8], index: 0, kind: input, shape index: {}]   ;;  %s29_s1 = inlined_call_operand.vmem [shape: f32[16,8], index: 1, kind: output, shape index: {}]  }
   0x1   :  { %v4_v0 = vld [vmem:[%s28_s0] ss:$0 sm:$0xff] }
   0x2   :  { %5 = vst [vmem:[%s29_s1] sm:$0xff] %v4_v0  ;;  %8 = vst [vmem:[%s29_s1 + $0x8] sm:$0xff] %v4_v0 }

// kernel: conv_bn_relu.1
= control target key start
LH: loop header
LB: loop body
LE: loop exit
PB: predicated region body
PF: predicated region fallthrough
CT: control target
= control target key end

     0   :  { %vm34_vm0 = vcmask 523264   ;;  %s1075_s1 = inlined_call_operand.vmem [shape: f32[3,64,128], index: 1, kind: input, shape index: {}]   ;;  %s1076_s0 = inlined_call_operand.vmem [shape: f32[2,18,64], index: 0, kind: input, shape index: {}]   ;;  %s1077_s2 = inlined_call_operand.vmem [shape: f32[2,16,128], index: 2, kind: output, shape index: {0}]   ;;  %s1078_s3 = inlined_call_operand.vmem [shape: f32[2,2,128], index: 3, kind: output, shape index: {1}]  }
   0x1   :  { %v624_v0 = vld [vmem:[%s1075_s1 + $0x78] sm:$0xff]  ;;  %v876_v2 = vld [vmem:[%s1075_s1 + $0x70] sm:$0xff]  ;;  %v888_v4 = vld [vmem:[%s1075_s1 + $0x68] sm:$0xff] }
   0x2   :  { %v871_v1 = vld [vmem:[%s1075_s1 + $0x38] sm:$0xff]  ;;  %731 = vmatprep.subr.mxu0 %v624_v0  ;;  %v882_v3 = vld [vmem:[%s1075_s1 + $0x30] sm:$0xff]  ;;  %v893_v5 = vld [vmem:[%s1075_s1 + $0x28] sm:$0xff] }
   0x3   :  { %750 = vmatprep.subr.mxu1 %v871_v1  ;;  %732 = vmatpush3.msra.mxu0 %v624_v0  ;;  %v902_v6 = vld [vmem:[%s1075_s1 + $0x60] sm:$0xff]  ;;  %v620_v8 = vld [vmem:[%s1075_s1 + $0x58] sm:$0xff]  ;;  %v619_v10 = vld [vmem:[%s1075_s1 + $0x50] sm:$0xff] }
   0x4   :  { %751 = vmatpush3.msra.mxu1 %v871_v1  ;;  %733 = vmatprep.subr.mxu0 %v876_v2  ;;  %v907_v7 = vld [vmem:[%s1075_s1 + $0x20] sm:$0xff]  ;;  %v919_v9 = vld [vmem:[%s1075_s1 + $0x18] sm:$0xff]  ;;  %v931_v11 = vld [vmem:[%s1075_s1 + $0x10] sm:$0xff] }
   0x5   :  { %752 = vmatprep.subr.mxu1 %v882_v3  ;;  %734 = vmatpush3.msra.mxu0 %v876_v2  ;;  %v618_v12 = vld [vmem:[%s1075_s1 + $0x48] sm:$0xff]  ;;  %v617_v14 = vld [vmem:[%s1075_s1 + $0x40] sm:$0xff]  ;;  %v636_v20 = vld [vmem:[%s1075_s1 + $0xb8] sm:$0xff] }
   0x6   :  { %753 = vmatpush3.msra.mxu1 %v882_v3  ;;  %735 = vmatprep.subr.mxu0 %v888_v4  ;;  %v941_v13 = vld [vmem:[%s1075_s1 + $0x8] sm:$0xff]  ;;  %v951_v15 = vld [vmem:[%s1075_s1] sm:$0xff]  ;;  %v635_v21 = vld [vmem:[%s1075_s1 + $0xb0] sm:$0xff] }
   0x7   :  { %754 = vmatprep.subr.mxu1 %v893_v5  ;;  %736 = vmatpush3.msra.mxu0 %v888_v4  ;;  %v23_v16 = vld [vmem:[%s1076_s0 + $0x1] sm:$0xff]  ;;  %v24_v18 = vld [vmem:[%s1076_s0 + $0x9] sm:$0xff]  ;;  %v632_v24 = vld [vmem:[%s1075_s1 + $0x98] sm:$0xff] }
   0x8   :  { %755 = vmatpush3.msra.mxu1 %v893_v5  ;;  %737 = vmatprep.subr.mxu0 %v902_v6  ;;  %v13_v17 = vld [vmem:[%s1076_s0] sm:$0xff]  ;;  %v14_v19 = vld [vmem:[%s1076_s0 + $0x8] sm:$0xff]  ;;  %v631_v25 = vld [vmem:[%s1075_s1 + $0x90] sm:$0xff] }
   0x9   :  { %756 = vmatprep.subr.mxu1 %v907_v7  ;;  %738 = vmatpush3.msra.mxu0 %v902_v6  ;;  %v634_v22 = vld [vmem:[%s1075_s1 + $0xa8] sm:$0xff]  ;;  %v633_v23 = vld [vmem:[%s1075_s1 + $0xa0] sm:$0xff]  ;;  %v639_v32 = vld [vmem:[%s1076_s0 + $0x18] sm:$0xff] }
   0xa   :  { %757 = vmatpush3.msra.mxu1 %v907_v7  ;;  %739 = vmatprep.subr.mxu0 %v620_v8  ;;  %v630_v26 = vld [vmem:[%s1075_s1 + $0x88] sm:$0xff]  ;;  %v629_v27 = vld [vmem:[%s1075_s1 + $0x80] sm:$0xff] }
   0xb   :  { %758 = vmatprep.subr.mxu1 %v919_v9  ;;  %740 = vmatpush3.msra.mxu0 %v620_v8  ;;  %v197_v28 = vld [vmem:[%s1076_s0 + $0x2] sm:$0xff]  ;;  %v198_v29 = vld [vmem:[%s1076_s0 + $0xa] sm:$0xff]  ;;  %v641_v30 = vld [vmem:[%s1076_s0 + $0x19] sm:$0xff] }
   0xc   :  { %759 = vmatpush3.msra.mxu1 %v919_v9  ;;  %741 = vmatprep.subr.mxu0 %v619_v10  ;;  %v642_v31 = vld [vmem:[%s1076_s0 + $0x21] sm:$0xff] }
   0xd   :  { %760 = vmatprep.subr.mxu1 %v931_v11  ;;  %742 = vmatpush3.msra.mxu0 %v619_v10  ;;  %v655_v33 = vld [vmem:[%s1076_s0 + $0x1a] sm:$0xff]  ;;  %v656_v35 = vld [vmem:[%s1076_s0 + $0x22] sm:$0xff] }
   0xe   :  { %761 = vmatpush3.msra.mxu1 %v931_v11  ;;  %743 = vmatprep.subr.mxu0 %v618_v12  ;;  %v640_v34 = vld [vmem:[%s1076_s0 + $0x20] sm:$0xff] }
   0xf   :  { %762 = vmatprep.subr.mxu1 %v941_v13  ;;  %744 = vmatpush3.msra.mxu0 %v618_v12 }
  0x10   :  { %763 = vmatpush3.msra.mxu1 %v941_v13  ;;  %745 = vmatprep.subr.mxu0 %v617_v14 }
  0x11   :  { %764 = vmatprep.subr.mxu1 %v951_v15  ;;  %746 = vmatpush3.msra.mxu0 %v617_v14 }
  0x12   :  { %747 = vmatprep.mubr.msk.f32.mxu0 %vm34_vm0, %v23_v16  ;;  %765 = vmatpush3.msra.mxu1 %v951_v15 }
  0x13   :  { %766 = vmatprep.mubr.msk.f32.mxu1 %vm34_vm0, %v13_v17  ;;  %748 = vmatmul.mubr.msk.f32.vlgmr.msra.gmra.mxu0 %vm34_vm0, %v24_v18 }
  0x14   :  { %767 = vmatmul.mubr.msk.f32.vlgmr.msra.gmra.mxu1 %vm34_vm0, %v14_v19  ;;  %769 = vmatprep.subr.mxu0 %v636_v20 }
  0x15   :  { %788 = vmatprep.subr.mxu1 %v624_v0  ;;  %770 = vmatpush3.msra.mxu0 %v636_v20 }
  0x16   :  { %789 = vmatpush3.msra.mxu1 %v624_v0  ;;  %771 = vmatprep.subr.mxu0 %v635_v21 }
  0x17   :  { %790 = vmatprep.subr.mxu1 %v876_v2  ;;  %772 = vmatpush3.msra.mxu0 %v635_v21 }
  0x18   :  { %791 = vmatpush3.msra.mxu1 %v876_v2  ;;  %773 = vmatprep.subr.mxu0 %v634_v22 }
  0x19   :  { %792 = vmatprep.subr.mxu1 %v888_v4  ;;  %774 = vmatpush3.msra.mxu0 %v634_v22 }
  0x1a   :  { %793 = vmatpush3.msra.mxu1 %v888_v4  ;;  %775 = vmatprep.subr.mxu0 %v633_v23 }
  0x1b   :  { %794 = vmatprep.subr.mxu1 %v902_v6  ;;  %776 = vmatpush3.msra.mxu0 %v633_v23 }
  0x1c   :  { %795 = vmatpush3.msra.mxu1 %v902_v6  ;;  %777 = vmatprep.subr.mxu0 %v632_v24 }
  0x1d   :  { %796 = vmatprep.subr.mxu1 %v620_v8  ;;  %778 = vmatpush3.msra.mxu0 %v632_v24 }
  0x1e   :  { %797 = vmatpush3.msra.mxu1 %v620_v8  ;;  %779 = vmatprep.subr.mxu0 %v631_v25 }
  0x1f   :  { %798 = vmatprep.subr.mxu1 %v619_v10  ;;  %780 = vmatpush3.msra.mxu0 %v631_v25 }
  0x20   :  { %799 = vmatpush3.msra.mxu1 %v619_v10  ;;  %781 = vmatprep.subr.mxu0 %v630_v26 }
  0x21   :  { %800 = vmatprep.subr.mxu1 %v618_v12  ;;  %782 = vmatpush3.msra.mxu0 %v630_v26 }
  0x22   :  { %801 = vmatpush3.msra.mxu1 %v618_v12  ;;  %783 = vmatprep.subr.mxu0 %v629_v27 }
  0x23   :  { %802 = vmatprep.subr.mxu1 %v617_v14  ;;  %784 = vmatpush3.msra.mxu0 %v629_v27 }
  0x24   :  { %785 = vmatprep.mubr.msk.f32.mxu0 %vm34_vm0, %v197_v28  ;;  %803 = vmatpush3.msra.mxu1 %v617_v14 }
  0x25   :  { %786 = vmatmul.mubr.msk.f32.vlgmr.msra.gmra.mxu0 %vm34_vm0, %v198_v29  ;;  %804 = vmatprep.mubr.msk.f32.mxu1 %vm34_vm0, %v641_v30 }
  0x26   :  { %807 = vmatprep.subr.mxu0 %v871_v1  ;;  %826 = vmatprep.subr.mxu1 %v636_v20 }
  0x27   :  { %805 = vmatmul.mubr.msk.f32.vlgmr.msra.gmra.mxu1 %vm34_vm0, %v642_v31  ;;  %808 = vmatpush3.msra.mxu0 %v871_v1 }
  0x28   :  { %827 = vmatpush3.msra.mxu1 %v636_v20  ;;  %809 = vmatprep.subr.mxu0 %v882_v3 }
  0x29   :  { %828 = vmatprep.subr.mxu1 %v635_v21  ;;  %810 = vmatpush3.msra.mxu0 %v882_v3 }
  0x2a   :  { %829 = vmatpush3.msra.mxu1 %v635_v21  ;;  %811 = vmatprep.subr.mxu0 %v893_v5 }
  0x2b   :  { %830 = vmatprep.subr.mxu1 %v634_v22  ;;  %812 = vmatpush3.msra.mxu0 %v893_v5 }
  0x2c   :  { %831 = vmatpush3.msra.mxu1 %v634_v22  ;;  %813 = vmatprep.subr.mxu0 %v907_v7 }
  0x2d   :  { %832 = vmatprep.subr.mxu1 %v633_v23  ;;  %814 = vmatpush3.msra.mxu0 %v907_v7 }
  0x2e   :  { %833 = vmatpush3.msra.mxu1 %v633_v23  ;;  %815 = vmatprep.subr.mxu0 %v919_v9 }
  0x2f   :  { %834 = vmatprep.subr.mxu1 %v632_v24  ;;  %816 = vmatpush3.msra.mxu0 %v919_v9 }
  0x30   :  { %835 = vmatpush3.msra.mxu1 %v632_v24  ;;  %817 = vmatprep.subr.mxu0 %v931_v11 }
  0x31   :  { %836 = vmatprep.subr.mxu1 %v631_v25  ;;  %818 = vmatpush3.msra.mxu0 %v931_v11 }
  0x32   :  { %837 = vmatpush3.msra.mxu1 %v631_v25  ;;  %819 = vmatprep.subr.mxu0 %v941_v13 }
  0x33   :  { %838 = vmatprep.subr.mxu1 %v630_v26  ;;  %820 = vmatpush3.msra.mxu0 %v941_v13 }
  0x34   :  { %839 = vmatpush3.msra.mxu1 %v630_v26  ;;  %821 = vmatprep.subr.mxu0 %v951_v15 }
  0x35   :  { %840 = vmatprep.subr.mxu1 %v629_v27  ;;  %822 = vmatpush3.msra.mxu0 %v951_v15 }
  0x36   :  { %823 = vmatprep.mubr.msk.f32.mxu0 %vm34_vm0, %v639_v32  ;;  %841 = vmatpush3.msra.mxu1 %v629_v27 }
  0x37   :  { %842 = vmatprep.mubr.msk.f32.mxu1 %vm34_vm0, %v655_v33  ;;  %824 = vmatmul.mubr.msk.f32.vlgmr.msra.gmra.mxu0 %vm34_vm0, %v640_v34 }
  0x38   :  { %843 = vmatmul.mubr.msk.f32.vlgmr.msra.gmra.mxu1 %vm34_vm0, %v656_v35 }
  0xd3   :  { %v749_v36 = vpop.f32.mrf.mxu0 }
  0xd4   :  { %v768_v37 = vpop.f32.mrf.mxu1 }
  0xd5   :  { %v107_v38 = vpop.f32.mrf.mxu0  ;;  %v194_v40 = vadd.f32 %v768_v37, %v749_v36 }
  0xd6   :  { %v188_v39 = vpop.f32.mrf.mxu1 }
  0xd7   :  { %v189_v42 = vadd.f32 %v188_v39, %v107_v38 }
  0xe5   :  { %v787_v41 = vpop.f32.mrf.mxu0 }
  0xe6   :  { %v290_v43 = vadd.f32 %v787_v41, %v194_v40 }
  0xe7   :  { %v280_v44 = vpop.f32.mrf.mxu0  ;;  %v806_v55 = vpop.f32.mrf.mxu1 }
  0xe8   :  { %292 = vst [vmem:[%s1077_s2 + $0x8] sm:$0xff] %v290_v43  ;;  %v289_v45 = vadd.f32 %v280_v44, %v189_v42  ;;  %v302_v46 = vmul.f32 %v290_v43, %v290_v43 }
  0xe9   :  { %v404_v62 = vpop.f32.mrf.mxu1 }
  0xea   :  { %291 = vst [vmem:[%s1077_s2] sm:$0xff] %v289_v45  ;;  %v293_v47 = vadd.f32 %v290_v43, %v289_v45  ;;  %v301_v48 = vmul.f32 %v289_v45, %v289_v45 }
  0xec   :  { %v294_v49 = vrot.slane %v293_v47, 4  ;;  %v303_v50 = vadd.f32 %v302_v46, %v301_v48 }
  0xee   :  { %v295_v51 = vadd.f32 %v294_v49, %v293_v47  ;;  %v304_v52 = vrot.slane %v303_v50, 4 }
  0xf0   :  { %v296_v53 = vrot.slane %v295_v51, 2  ;;  %v305_v54 = vadd.f32 %v304_v52, %v303_v50 }
  0xf2   :  { %v297_v56 = vadd.f32 %v296_v53, %v295_v51  ;;  %v306_v57 = vrot.slane %v305_v54, 2 }
  0xf4   :  { %v298_v58 = vrot.slane %v297_v56, 1  ;;  %v307_v59 = vadd.f32 %v306_v57, %v305_v54 }
  0xf6   :  { %v299_v60 = vadd.f32 %v298_v58, %v297_v56  ;;  %v308_v61 = vrot.slane %v307_v59, 1 }
  0xf7   :  { %v825_v0 = vpop.f32.mrf.mxu0 }
  0xf8   :  { %300 = vst [vmem:[%s1078_s3] sm:$0x1] %v299_v60  ;;  %v309_v63 = vadd.f32 %v308_v61, %v307_v59  ;;  %v844_v1 = vpop.f32.mrf.mxu1  ;;  %v491_v2 = vadd.f32 %v825_v0, %v806_v55 }
  0xf9   :  { %v485_v3 = vpop.f32.mrf.mxu0 }
  0xfa   :  { %310 = vst [vmem:[%s1078_s3 + $0x1] sm:$0x1] %v309_v63  ;;  %v586_v4 = vadd.f32 %v844_v1, %v491_v2  ;;  %v486_v5 = vadd.f32 %v485_v3, %v404_v62  ;;  %v576_v6 = vpop.f32.mrf.mxu1 }
  0xfc   :  { %668 = vst [vmem:[%s1077_s2 + $0x18] sm:$0xff] %v586_v4  ;;  %v585_v7 = vadd.f32 %v576_v6, %v486_v5  ;;  %v600_v8 = vmul.f32 %v586_v4, %v586_v4 }
  0xfe   :  { %667 = vst [vmem:[%s1077_s2 + $0x10] sm:$0xff] %v585_v7  ;;  %v590_v9 = vadd.f32 %v586_v4, %v585_v7  ;;  %v599_v10 = vmul.f32 %v585_v7, %v585_v7 }
 0x100   :  { %v591_v11 = vrot.slane %v590_v9, 4  ;;  %v601_v12 = vadd.f32 %v600_v8, %v599_v10 }
 0x102   :  { %v592_v13 = vadd.f32 %v591_v11, %v590_v9  ;;  %v602_v14 = vrot.slane %v601_v12, 4 }
 0x104   :  { %v593_v15 = vrot.slane %v592_v13, 2  ;;  %v603_v16 = vadd.f32 %v602_v14, %v601_v12 }
 0x106   :  { %v594_v17 = vadd.f32 %v593_v15, %v592_v13  ;;  %v604_v18 = vrot.slane %v603_v16, 2 }
 0x108   :  { %v595_v19 = vrot.slane %v594_v17, 1  ;;  %v605_v20 = vadd.f32 %v604_v18, %v603_v16 }
 0x10a   :  { %v596_v21 = vadd.f32 %v595_v19, %v594_v17  ;;  %v606_v22 = vrot.slane %v605_v20, 1 }
 0x10c   :  { %669 = vst [vmem:[%s1078_s3 + $0x2] sm:$0x1] %v596_v21  ;;  %v607_v23 = vadd.f32 %v606_v22, %v605_v20 }
 0x10e   :  { %670 = vst [vmem:[%s1078_s3 + $0x3] sm:$0x1] %v607_v23 }

</bundles_post_ra>
